<compile_context>
chip_gen: v7x
topology: tpu7x:2x2x1
jax: 0.10.0
libtpu: 0.0.40
codegen_flags: <defaults>
</compile_context>

<pallas_src>
import jax
import jax.numpy as jnp
import numpy as np
from jax.experimental import pallas as pl
from jax.experimental.pallas import tpu as pltpu


def simple_model_kernel(x_ref, w_ref, b_ref, mask_ref, y_ref, gt_ref):
    # Linear with D_out == 1, done on the VPU (multiply) + XLU (lane reduce):
    #   y[i, 0] = sum_k x[i, k] * w[0, k] + b
    x = x_ref[...]                                   # [B, D_in]  f32
    w = w_ref[...]                                   # [1, D_in]  f32 (nn.Linear weight row)
    y = jnp.sum(x * w, axis=-1, keepdims=True) + b_ref[...]    # [B, 1]
    y_ref[...] = y

    # threshold = y.sum(axis=1).mean()  == sum(y) / B while the whole batch
    # lives in this single invocation (guard this before any batch tiling).
    thr = jnp.sum(y) * (1.0 / y.shape[0])            # scalar

    # Lane-dense compare: mask arrives flattened to (1, M0*M1); store as int8.
    gt_ref[...] = (mask_ref[...] > thr).astype(jnp.int8)


def simple_model_forward(x, weight, bias, mask):
    """Returns (y, (idx0, idx1)) matching SimpleModel.forward.

    x:      [B, D_in]  f32
    weight: [D_out, D_in] f32  (PyTorch nn.Linear layout, D_out must be 1)
    bias:   [D_out]    f32
    mask:   [M0, M1]   f32
    """
    B, D_in = x.shape
    D_out = weight.shape[0]
    assert D_out == 1, "kernel specialises the D_out=1 projection onto the VPU"
    M0, M1 = mask.shape

    # Lane-dense presentation of the mask: (8, 16) -> (1, 128).
    mask_flat = mask.reshape(1, M0 * M1)
    b2d = bias.reshape(1, D_out)

    vmem = pl.BlockSpec(memory_space=pltpu.MemorySpace.VMEM)

    y, gt_flat = pl.pallas_call(
        simple_model_kernel,
        out_shape=(
            jax.ShapeDtypeStruct((B, D_out), jnp.float32),
            jax.ShapeDtypeStruct((1, M0 * M1), jnp.int8),
        ),
        in_specs=[vmem, vmem, vmem, vmem],
        out_specs=(vmem, vmem),
    )(x, weight, b2d, mask_flat)

    # nonzero(as_tuple=True): dynamic shape -> done on the concrete result.
    # jnp.nonzero works directly on the 0/1 int8 array (no bool cast op).
    gt = gt_flat.reshape(M0, M1)
    nz = jnp.nonzero(gt)
    return y, nz


if __name__ == "__main__":
    B, D_IN, D_OUT = 8, 10, 1
    M0, M1 = 8, 16

    # Deterministic parameter init (matches nn.Linear(10, 1, bias=True) shapes).
    kw, kb, kx, km = jax.random.split(jax.random.PRNGKey(0), 4)
    bound = 1.0 / np.sqrt(D_IN)
    weight = jax.random.uniform(kw, (D_OUT, D_IN), jnp.float32, -bound, bound)
    bias = jax.random.uniform(kb, (D_OUT,), jnp.float32, -bound, bound)

    # Example inputs.
    x = jax.random.normal(kx, (B, D_IN), jnp.float32)
    mask = jax.random.normal(km, (M0, M1), jnp.float32)

    y, nz = simple_model_forward(x, weight, bias, mask)
    jax.block_until_ready(y)
    for idx in nz:
        jax.block_until_ready(idx)

    # Reference check against plain JAX (same math as the PyTorch module).
    y_ref = x @ weight.T + bias.reshape(1, D_OUT)
    thr_ref = y_ref.sum(axis=1).mean()
    nz_ref = jnp.nonzero(mask > thr_ref)
    assert np.allclose(np.asarray(y), np.asarray(y_ref), rtol=1e-5, atol=1e-5)
    assert all(
        np.array_equal(np.asarray(a), np.asarray(r)) for a, r in zip(nz, nz_ref)
    )

    print("KERNEL_OK")
</pallas_src>

<mosaic_0001>
module attributes {stable_mosaic.version = 11 : i64} {
  func.func @simple_model_kernel(%arg0: memref<8x10xf32, #tpu.memory_space<vmem>>, %arg1: memref<1x10xf32, #tpu.memory_space<vmem>>, %arg2: memref<1x1xf32, #tpu.memory_space<vmem>>, %arg3: memref<1x128xf32, #tpu.memory_space<vmem>>, %arg4: memref<8x1xf32, #tpu.memory_space<vmem>>, %arg5: memref<1x128xi8, #tpu.memory_space<vmem>>) attributes {dimension_semantics = [], scalar_prefetch = 0 : i64, scratch_operands = 0 : i64, tpu.core_type = #tpu.core_type<tc>} {
    %c0 = arith.constant 0 : index
    %c0_0 = arith.constant 0 : index
    %0 = vector.load %arg0[%c0, %c0_0] : memref<8x10xf32, #tpu.memory_space<vmem>>, vector<8x10xf32>
    %c0_1 = arith.constant 0 : index
    %c0_2 = arith.constant 0 : index
    %1 = vector.load %arg1[%c0_1, %c0_2] : memref<1x10xf32, #tpu.memory_space<vmem>>, vector<1x10xf32>
    %2 = vector.broadcast %1 : vector<1x10xf32> to vector<8x10xf32>
    %3 = arith.mulf %0, %2 : vector<8x10xf32>
    %cst = arith.constant dense<0.000000e+00> : vector<8xf32>
    %4 = vector.multi_reduction <add>, %3, %cst [1] : vector<8x10xf32> to vector<8xf32>
    %5 = vector.shape_cast %4 : vector<8xf32> to vector<8x1xf32>
    %c0_3 = arith.constant 0 : index
    %c0_4 = arith.constant 0 : index
    %6 = vector.load %arg2[%c0_3, %c0_4] : memref<1x1xf32, #tpu.memory_space<vmem>>, vector<1x1xf32>
    %7 = vector.broadcast %6 : vector<1x1xf32> to vector<8x1xf32>
    %8 = arith.addf %5, %7 : vector<8x1xf32>
    %c0_5 = arith.constant 0 : index
    %c0_6 = arith.constant 0 : index
    %9 = vector.load %arg4[%c0_5, %c0_6] : memref<8x1xf32, #tpu.memory_space<vmem>>, vector<8x1xf32>
    tpu.vector_store %arg4[%c0_5, %c0_6], %8 {strides = array<i32>} : memref<8x1xf32, #tpu.memory_space<vmem>>, vector<8x1xf32>,
    %10 = vector.shape_cast %8 : vector<8x1xf32> to vector<1x8x1xf32>
    %cst_7 = arith.constant dense<0.000000e+00> : vector<1xf32>
    %11 = vector.multi_reduction <add>, %10, %cst_7 [1, 2] : vector<1x8x1xf32> to vector<1xf32>
    %12 = vector.shape_cast %11 : vector<1xf32> to vector<1x1x1xf32>
    %13 = vector.extract %12[0, 0, 0] : f32 from vector<1x1x1xf32>
    %cst_8 = arith.constant 1.250000e-01 : f32
    %14 = arith.mulf %13, %cst_8 : f32
    %c0_9 = arith.constant 0 : index
    %c0_10 = arith.constant 0 : index
    %15 = vector.load %arg3[%c0_9, %c0_10] : memref<1x128xf32, #tpu.memory_space<vmem>>, vector<1x128xf32>
    %16 = vector.broadcast %14 : f32 to vector<1x128xf32>
    %17 = arith.cmpf ogt, %15, %16 : vector<1x128xf32>
    %18 = arith.extui %17 : vector<1x128xi1> to vector<1x128xi8>
    %c0_11 = arith.constant 0 : index
    %c0_12 = arith.constant 0 : index
    %19 = vector.load %arg5[%c0_11, %c0_12] : memref<1x128xi8, #tpu.memory_space<vmem>>, vector<1x128xi8>
    tpu.vector_store %arg5[%c0_11, %c0_12], %18 {strides = array<i32>} : memref<1x128xi8, #tpu.memory_space<vmem>>, vector<1x128xi8>,
    return
  }
}

</mosaic_0001>

<bundles_post_ra>
// kernel: tpu_custom_call.1
= control target key start
LH: loop header
LB: loop body
LE: loop exit
PB: predicated region body
PF: predicated region fallthrough
CT: control target
= control target key end

     0   :  { %s227_s0 = inlined_call_operand.hbm [shape: f32[8,10], index: 0, kind: input, shape index: {}]   ;;  %s228_s1 = inlined_call_operand.vmem [shape: f32[1,10], index: 1, kind: input, shape index: {}]   ;;  %s229_s2 = inlined_call_operand.<no memory space> [shape: f32[1,1], index: 2, kind: input, shape index: {}]   ;;  %s230_s3 = inlined_call_operand.vmem [shape: f32[1,128], index: 3, kind: input, shape index: {}]   ;;  %s231_s4 = inlined_call_operand.vmem [shape: f32[8,1], index: 4, kind: output, shape index: {0}]   ;;  %s232_s5 = inlined_call_operand.hbm [shape: s8[1,128], index: 5, kind: output, shape index: {1}]  }
   0x1   :  { %v11_v0 = vstv %s229_s2 }
   0x2   :  { %12 = vst [vmem:[#allocation2] sm:$0x1] %v11_v0 }
   0x3   :  { %13 = vsyncpa [#allocation4], 0 }
   0x4   :  { %14 = vsyncpa [#allocation5], 0  ;;  %s158_s20 = smov [#allocation3]   ;;  %s110_s24 = scalar_lea.hbm %s227_s0, 128 }
   0x5   :  { %s21_s21 = sshll.u32 %s158_s20, 4  ;;  %p111_p0 = scmp.ne.s32.totalorder %s227_s0, %s110_s24  ;;  %s22_s21 = int_to_ptr.vmem [resolvable:$true] %s21_s21 }
   0x6   :  { %p114_p1 = scmp.lt.u32.totalorder %s110_s24, %s227_s0 }
   0x8   :  { %p116_p2 = pnand %p114_p1, %p111_p0 }
   0xa   :  { %119 = shalt.err (!%p116_p2)
}
   0xb   :  { %s120_s2 = scalar_lea.vmem %s22_s21, 128  ;;  %p125_p4 = scmp.lt.s32.totalorder %s22_s21, %s22_s21 }
   0xc   :  { %p121_p3 = scmp.ne.s32.totalorder %s22_s21, %s120_s2  ;;  %p126_p5 = scmp.lt.s32.totalorder %s120_s2, %s120_s2 }
   0xe   :  { %p127_p6 = por %p126_p5, %p125_p4 }
  0x10   :  { %p128_p7 = pnand %p127_p6, %p121_p3 }
  0x12   :  { %131 = shalt.err (!%p128_p7)
}
  0x13   :  { %24 = dma.hbm_to_vmem [thread:$0]  %s227_s0, 128, %s22_s21, [#allocation4]  }
  0x14   :  { %154 = dma.done.wait [#allocation4], 128  }
  0x15   :  { %155 = vsyncadd [#allocation4], 4294967168  ;;  %v36_v1 = vld [vmem:[#allocation3] sm:$0xff]  ;;  %v103_v2 = vld [vmem:[%s228_s1] ss:$0 sm:$0xff]  ;;  %vm45_vm0 = vcmask 80896  }
  0x16   :  { %v44_v3 = vmul.f32 %v103_v2, %v36_v1  ;;  %v104_v5 = vld [vmem:[#allocation2] ss:$0 sm:$0xff]  ;;  %vm57_vm1 = vcmask 7168   ;;  %v159_v18 = vmov 0   ;;  %vm78_vm3 = vcmask 1040384  }
  0x17   :  { %v70_v16 = vld [vmem:[%s230_s3] sm:$0x1]  ;;  %vm79_vm4 = vsmask.f32 0  ;;  %v81_v22 = vld [vmem:[#allocation6] sm:$0x1] }
  0x18   :  { %v46_v4 = vsel %vm45_vm0, %v44_v3, 0.0  ;;  %vm80_vm5 = vmand %vm78_vm3, %vm79_vm4 }
  0x19   :  { %47 = vadd.xlane.f32.xlu0 %v46_v4 }
  0xa6   :  { %v48_v6 = vpop.xlane.xlu0 %47 }
  0xa7   :  { %v56_v7 = vadd.f32 %v104_v5, %v48_v6 }
  0xa9   :  { %v59_v8 = vsel %vm57_vm1, %v56_v7, 0.0  ;;  %58 = vst.msk [vmem:[%s231_s4] sm:$0xff] %vm57_vm1, %v56_v7  ;;  %s160_s4 = smov [#allocation6]  }
  0xaa   :  { %60 = vadd.xlane.f32.xlu0 %v59_v8  ;;  %s92_s12 = sshll.u32 %s160_s4, 4  ;;  %s93_s12 = int_to_ptr.vmem [resolvable:$true] %s92_s12 }
  0xab   :  { %s132_s13 = scalar_lea.vmem %s93_s12, 16  ;;  %s136_s3 = scalar_lea.vmem %s93_s12, 32 }
  0xac   :  { %p133_p8 = scmp.ne.s32.totalorder %s93_s12, %s132_s13  ;;  %p137_p9 = scmp.lt.s32.totalorder %s93_s12, %s93_s12 }
  0xad   :  { %p138_p10 = scmp.lt.s32.totalorder %s136_s3, %s132_s13 }
  0xaf   :  { %p139_p11 = por %p138_p10, %p137_p9 }
  0xb1   :  { %p140_p12 = pnand %p139_p11, %p133_p8 }
 0x137   :  { %v61_v9 = vpop.xlane.xlu0 %60 }
 0x138   :  { %v62_v10 = vrot.slane %v61_v9, 4 }
 0x13a   :  { %v63_v11 = vadd.f32 %v62_v10, %v61_v9 }
 0x13c   :  { %v64_v12 = vrot.slane %v63_v11, 2 }
 0x13e   :  { %v65_v13 = vadd.f32 %v64_v12, %v63_v11 }
 0x140   :  { %v66_v14 = vrot.slane %v65_v13, 1 }
 0x142   :  { %v67_v15 = vadd.f32 %v66_v14, %v65_v13 }
 0x144   :  { %105 = vpush %v67_v15 }
 0x175   :  { %s106_s0 = spop %105 }
 0x176   :  { %s69_s1 = smul.f32 0.125, %s106_s0 }
 0x178   :  { %v71_v17 = vstv %s69_s1 }
 0x179   :  { %vm72_vm2 = vcmp.gt.f32.partialorder %v70_v16, %v71_v17 }
 0x17a   :  { %v73_v19 = vsel %vm72_vm2, 1, %v159_v18 }
 0x17b   :  { %v74_v20 = vpack.c.b16 %v73_v19, %v73_v19 }
 0x17d   :  { %v75_v21 = vpack.c.b8 %v74_v20, %v74_v20 }
 0x17f   :  { %vm76_vm6 = vnez %v75_v21 }
 0x180   :  { %v77_v23 = vsel %vm76_vm6, 16843009, %v159_v18 }
 0x181   :  { %v82_v24 = vsel %vm80_vm5, %v77_v23, %v81_v22 }
 0x182   :  { %83 = vst [vmem:[#allocation6] sm:$0x1] %v82_v24 }
 0x183   :  { %143 = shalt.err (!%p140_p12)
}
 0x184   :  { %s144_s16 = scalar_lea.hbm %s232_s5, 16 }
 0x185   :  { %p145_p13 = scmp.ne.s32.totalorder %s232_s5, %s144_s16  ;;  %p148_p0 = scmp.lt.u32.totalorder %s144_s16, %s232_s5 }
 0x187   :  { %p150_p1 = pnand %p148_p0, %p145_p13 }
 0x189   :  { %153 = shalt.err (!%p150_p1)
}
 0x18a   :  { %95 = dma.vmem_to_hbm [thread:$0]  %s93_s12, 16, %s232_s5, [#allocation5]  }
 0x18b   :  { %156 = dma.done.wait [#allocation5], 16  }
 0x18c   :  { %157 = vsyncadd [#allocation5], 4294967280 }
 0x18d   :  { %101 = vsyncpa [#allocation4], 1 }
 0x18e   :  { %102 = vsyncpa [#allocation5], 1 }

</bundles_post_ra>
